<compile_context>
chip_gen: v7x
topology: tpu7x:2x2x1
jax: 0.10.0
libtpu: 0.0.40
codegen_flags: <defaults>
</compile_context>

<pallas_src>
import functools

import jax
import jax.numpy as jnp
from jax.experimental import pallas as pl
from jax.experimental.pallas import tpu as pltpu


def _round_up(x, mult):
    return ((x + mult - 1) // mult) * mult


def _atten_conv_kernel(x_ref, f_ref, ftp_ref, b_ref, o_ref, *g_refs, l, need_g):
    # x_ref:   (R, Cn)  im2col slab (window-major rows when need_g)
    # f_ref:   (Cn, m)  F = weight.permute(1,2,0).reshape(Cn, m)
    # ftp_ref: (m, Np)  F^T zero-padded on lanes to Np (multiple of 128)
    # b_ref:   (1, m)   conv bias
    # o_ref:   (R, Np)  projected output rows (lanes [Cn:] are zero)
    # g_refs:  ((P, Np),) pooled + projected rows, if need_g

    # Conv1d('same') over all batches & taps == one matmul on the im2col slab.
    M = jnp.dot(x_ref[...], f_ref[...],
                preferred_element_type=jnp.float32) + b_ref[...]          # (R, m)

    # O = M @ F^T ; padded lane width -> unmasked, lane-dense stores.
    o_ref[...] = jnp.dot(M, ftp_ref[...],
                         preferred_element_type=jnp.float32).astype(o_ref.dtype)

    if need_g:
        g_ref = g_refs[0]
        P = g_ref.shape[0]
        # MaxPool1d(l): window-major row order => window p is {i*P + p : i < l};
        # max over l contiguous, sublane-aligned (P, m) slabs (VPU only).
        Mm = M[0:P, :]
        for i in range(1, l):
            Mm = jnp.maximum(Mm, M[i * P:(i + 1) * P, :])
        g_ref[...] = jnp.dot(Mm, ftp_ref[...],
                             preferred_element_type=jnp.float32).astype(g_ref.dtype)


def atten_conv_forward(Q, weight, bias, *, n, h, l, need_g):
    """Q: (B, C, L) f32; weight: (m, C, n) = Conv1d.weight; bias: (m,).

    Returns (O, G) matching Atten_Conv.forward:
      O: (B, L, C*n);  G: (B//h, L//l, h*C*n) if need_g else None.
    """
    B, C, L = Q.shape
    m = weight.shape[0]
    Cn = C * n
    if need_g:
        assert L % l == 0, "MaxPool1d(l) path requires L % l == 0"
        assert B % h == 0, "transpose_output requires batch divisible by num_heads"

    # ---- wrapper-side im2col (layout plumbing on a tiny tensor; fused by XLA) ----
    pad_left = (n - 1) // 2                     # matches PyTorch Conv1d padding='same'
    pad_right = (n - 1) - pad_left
    Qpad = jnp.pad(Q, ((0, 0), (0, 0), (pad_left, pad_right)))            # (B, C, L+n-1)
    taps = jnp.stack([Qpad[:, :, k:k + L] for k in range(n)], axis=2)     # (B, C, n, L)
    Xcol = taps.transpose(0, 3, 1, 2).reshape(B, L, Cn)                   # (B, L, Cn)

    if need_g:
        P = B * (L // l)
        # window-major rows: row = i*P + (b*(L//l) + t//l),  i = t % l
        X = (Xcol.reshape(B, L // l, l, Cn)
                  .transpose(2, 0, 1, 3)
                  .reshape(l * P, Cn))
    else:
        P = 0
        X = Xcol.reshape(B * L, Cn)
    R = X.shape[0]

    # F and a lane-padded F^T so both kernel matmuls store lane-dense slabs.
    F_mat = jnp.transpose(weight, (1, 2, 0)).reshape(Cn, m).astype(jnp.float32)  # (Cn, m)
    Np = _round_up(Cn, 128)
    FT_pad = jnp.pad(F_mat.T, ((0, 0), (0, Np - Cn)))                            # (m, Np)
    b_row = bias.reshape(1, m).astype(jnp.float32)

    out_shapes = [jax.ShapeDtypeStruct((R, Np), jnp.float32)]
    if need_g:
        out_shapes.append(jax.ShapeDtypeStruct((P, Np), jnp.float32))

    vmem_spec = pl.BlockSpec(memory_space=pltpu.MemorySpace.VMEM)
    flops = 2 * R * Cn * m + 2 * R * m * Np + (2 * P * m * Np if need_g else 0)
    bytes_accessed = 4 * (R * Cn + Cn * m + m * Np + m + R * Np + P * Np)

    kernel = functools.partial(_atten_conv_kernel, l=l, need_g=need_g)
    results = pl.pallas_call(
        kernel,
        out_shape=tuple(out_shapes),
        in_specs=[vmem_spec, vmem_spec, vmem_spec, vmem_spec],
        out_specs=tuple([vmem_spec] * len(out_shapes)),
        cost_estimate=pl.CostEstimate(flops=flops, transcendentals=0,
                                      bytes_accessed=bytes_accessed),
    )(X.astype(jnp.float32), F_mat, FT_pad, b_row)

    o_slab = results[0]
    if need_g:
        # un-permute the window-major rows back to (B, L, Cn)
        O = (o_slab[:, :Cn]
             .reshape(l, B, L // l, Cn)
             .transpose(1, 2, 0, 3)
             .reshape(B, L, Cn))
        g = results[1][:, :Cn].reshape(B, L // l, Cn)
        # transpose_output(g, h): pure reshape/permute glue
        G = (g.reshape(-1, h, L // l, Cn)
              .transpose(0, 2, 1, 3)
              .reshape(B // h, L // l, h * Cn))
    else:
        O = o_slab[:, :Cn].reshape(B, L, Cn)
        G = None
    return O, G


def _reference(Q, weight, bias, *, n, h, l, need_g):
    """Pure-JAX reference with PyTorch's exact 'same' padding split."""
    B, C, L = Q.shape
    pad_left = (n - 1) // 2
    pad_right = (n - 1) - pad_left
    M = jax.lax.conv_general_dilated(Q, weight, window_strides=(1,),
                                     padding=[(pad_left, pad_right)],
                                     dimension_numbers=("NCH", "OIH", "NCH"))
    M = M + bias[None, :, None]
    F_mat = jnp.transpose(weight, (1, 2, 0)).reshape(C * n, -1)
    O = jnp.einsum("jm,bmt->btj", F_mat, M)
    G = None
    if need_g:
        Mmax = jnp.max(M.reshape(B, -1, L // l, l), axis=-1)
        g = jnp.einsum("jm,bmt->btj", F_mat, Mmax)
        G = (g.reshape(-1, h, L // l, C * n)
              .transpose(0, 2, 1, 3)
              .reshape(B // h, L // l, h * C * n))
    return O, G


if __name__ == "__main__":
    # Module hyper-params: Atten_Conv(n=3, d=32, m=8, h=4, l=4, need_g=True)
    n, d, m, h, l = 3, 32, 8, 4, 4
    need_g = True
    C = d // h          # conv in_channels
    L = 16              # sequence length (divisible by l)
    B = 2 * h           # batch folded with heads (required by transpose_output)

    key = jax.random.PRNGKey(0)
    kq, kw, kb = jax.random.split(key, 3)
    Q = jax.random.normal(kq, (B, C, L), dtype=jnp.float32)
    weight = 0.1 * jax.random.normal(kw, (m, C, n), dtype=jnp.float32)  # Conv1d.weight
    bias = 0.1 * jax.random.normal(kb, (m,), dtype=jnp.float32)         # Conv1d.bias

    O, G = atten_conv_forward(Q, weight, bias, n=n, h=h, l=l, need_g=need_g)
    jax.block_until_ready((O, G))

    O_ref, G_ref = _reference(Q, weight, bias, n=n, h=h, l=l, need_g=need_g)
    assert O.shape == (B, L, C * n)
    assert G.shape == (B // h, L // l, h * C * n)
    assert jnp.allclose(O, O_ref, atol=1e-4, rtol=1e-4), float(jnp.max(jnp.abs(O - O_ref)))
    assert jnp.allclose(G, G_ref, atol=1e-4, rtol=1e-4), float(jnp.max(jnp.abs(G - G_ref)))

    # Also exercise the need_g=False branch.
    O2, G2 = atten_conv_forward(Q, weight, bias, n=n, h=h, l=l, need_g=False)
    jax.block_until_ready(O2)
    assert G2 is None
    assert jnp.allclose(O2, O_ref, atol=1e-4, rtol=1e-4)

    print("KERNEL_OK")
</pallas_src>

<mosaic_0001>
module attributes {stable_mosaic.version = 11 : i64} {
  func.func @_atten_conv_kernel(%arg0: memref<128x24xf32, #tpu.memory_space<vmem>>, %arg1: memref<24x8xf32, #tpu.memory_space<vmem>>, %arg2: memref<8x128xf32, #tpu.memory_space<vmem>>, %arg3: memref<1x8xf32, #tpu.memory_space<vmem>>, %arg4: memref<128x128xf32, #tpu.memory_space<vmem>>, %arg5: memref<32x128xf32, #tpu.memory_space<vmem>>) attributes {dimension_semantics = [], scalar_prefetch = 0 : i64, scratch_operands = 0 : i64, tpu.core_type = #tpu.core_type<tc>} {
    %c0 = arith.constant 0 : index
    %c0_0 = arith.constant 0 : index
    %0 = vector.load %arg0[%c0, %c0_0] : memref<128x24xf32, #tpu.memory_space<vmem>>, vector<128x24xf32>
    %c0_1 = arith.constant 0 : index
    %c0_2 = arith.constant 0 : index
    %1 = vector.load %arg1[%c0_1, %c0_2] : memref<24x8xf32, #tpu.memory_space<vmem>>, vector<24x8xf32>
    %cst = arith.constant dense<0.000000e+00> : vector<128x8xf32>
    %2 = tpu.matmul %0, %1, %cst {dimension_numbers = #tpu.dot_dimension_numbers<[1], [0], [0], [1], [0, 0, 1, 1], [], []>} : vector<128x24xf32>, vector<24x8xf32>, vector<128x8xf32> -> vector<128x8xf32>
    %c0_3 = arith.constant 0 : index
    %c0_4 = arith.constant 0 : index
    %3 = vector.load %arg3[%c0_3, %c0_4] : memref<1x8xf32, #tpu.memory_space<vmem>>, vector<1x8xf32>
    %4 = vector.broadcast %3 : vector<1x8xf32> to vector<128x8xf32>
    %5 = arith.addf %2, %4 : vector<128x8xf32>
    %c0_5 = arith.constant 0 : index
    %c0_6 = arith.constant 0 : index
    %6 = vector.load %arg2[%c0_5, %c0_6] : memref<8x128xf32, #tpu.memory_space<vmem>>, vector<8x128xf32>
    %cst_7 = arith.constant dense<0.000000e+00> : vector<128x128xf32>
    %7 = tpu.matmul %5, %6, %cst_7 {dimension_numbers = #tpu.dot_dimension_numbers<[1], [0], [0], [1], [0, 0, 1, 1], [], []>} : vector<128x8xf32>, vector<8x128xf32>, vector<128x128xf32> -> vector<128x128xf32>
    %c0_8 = arith.constant 0 : index
    %c0_9 = arith.constant 0 : index
    %8 = vector.load %arg4[%c0_8, %c0_9] : memref<128x128xf32, #tpu.memory_space<vmem>>, vector<128x128xf32>
    tpu.vector_store %arg4[%c0_8, %c0_9], %7 {strides = array<i32>} : memref<128x128xf32, #tpu.memory_space<vmem>>, vector<128x128xf32>,
    %9 = vector.extract_strided_slice %5 {offsets = [0, 0], sizes = [32, 8], strides = [1, 1]} : vector<128x8xf32> to vector<32x8xf32>
    %10 = vector.extract_strided_slice %5 {offsets = [32, 0], sizes = [32, 8], strides = [1, 1]} : vector<128x8xf32> to vector<32x8xf32>
    %11 = arith.maximumf %9, %10 : vector<32x8xf32>
    %12 = vector.extract_strided_slice %5 {offsets = [64, 0], sizes = [32, 8], strides = [1, 1]} : vector<128x8xf32> to vector<32x8xf32>
    %13 = arith.maximumf %11, %12 : vector<32x8xf32>
    %14 = vector.extract_strided_slice %5 {offsets = [96, 0], sizes = [32, 8], strides = [1, 1]} : vector<128x8xf32> to vector<32x8xf32>
    %15 = arith.maximumf %13, %14 : vector<32x8xf32>
    %c0_10 = arith.constant 0 : index
    %c0_11 = arith.constant 0 : index
    %16 = vector.load %arg2[%c0_10, %c0_11] : memref<8x128xf32, #tpu.memory_space<vmem>>, vector<8x128xf32>
    %cst_12 = arith.constant dense<0.000000e+00> : vector<32x128xf32>
    %17 = tpu.matmul %15, %16, %cst_12 {dimension_numbers = #tpu.dot_dimension_numbers<[1], [0], [0], [1], [0, 0, 1, 1], [], []>} : vector<32x8xf32>, vector<8x128xf32>, vector<32x128xf32> -> vector<32x128xf32>
    %c0_13 = arith.constant 0 : index
    %c0_14 = arith.constant 0 : index
    %18 = vector.load %arg5[%c0_13, %c0_14] : memref<32x128xf32, #tpu.memory_space<vmem>>, vector<32x128xf32>
    tpu.vector_store %arg5[%c0_13, %c0_14], %17 {strides = array<i32>} : memref<32x128xf32, #tpu.memory_space<vmem>>, vector<32x128xf32>,
    return
  }
}

</mosaic_0001>

<bundles_post_ra>
// kernel: tpu_custom_call.1
= control target key start
LH: loop header
LB: loop body
LE: loop exit
PB: predicated region body
PF: predicated region fallthrough
CT: control target
= control target key end

     0   :  { %11 = vsyncpa [#allocation3], 0  ;;  %vm47_vm0 = vcmask 195584   ;;  %s953_s0 = inlined_call_operand.vmem [shape: f32[128,24], index: 0, kind: input, shape index: {}]   ;;  %s954_s1 = inlined_call_operand.vmem [shape: f32[24,8], index: 1, kind: input, shape index: {}]   ;;  %s955_s2 = inlined_call_operand.vmem [shape: f32[8,128], index: 2, kind: input, shape index: {}]   ;;  %s956_s3 = inlined_call_operand.vmem [shape: f32[1,8], index: 3, kind: input, shape index: {}]   ;;  %s957_s4 = inlined_call_operand.hbm [shape: f32[128,128], index: 4, kind: output, shape index: {0}]   ;;  %s958_s5 = inlined_call_operand.hbm [shape: f32[32,128], index: 5, kind: output, shape index: {1}]  }
   0x1   :  { %v37_v0 = vld [vmem:[%s954_s1] sm:$0xff]  ;;  %v38_v1 = vld [vmem:[%s954_s1 + $0x8] sm:$0xff]  ;;  %v39_v4 = vld [vmem:[%s954_s1 + $0x10] sm:$0xff] }
   0x2   :  { %v740_v2 = vpack.c.bf16 %v38_v1, %v37_v0  ;;  %v21_v3 = vld [vmem:[%s953_s0] sm:$0xff]  ;;  %v22_v5 = vld [vmem:[%s953_s0 + $0x8] sm:$0xff] }
   0x3   :  { %682 = vmatprep.mubr.msk.f32.mxu0 %vm47_vm0, %v21_v3 }
   0x4   :  { %741 = vmatprep.subr.bf16.mxu0 %v740_v2 }
   0x5   :  { %743 = vmatpush3.bf16.msra.mxu0 %v740_v2 }
   0x6   :  { %680 = vmatprep.subr.mxu0 %v39_v4 }
   0x7   :  { %12 = vsyncpa [#allocation5], 0  ;;  %v23_v6 = vld [vmem:[%s953_s0 + $0x10] sm:$0xff]  ;;  %v24_v7 = vld [vmem:[%s953_s0 + $0x18] sm:$0xff]  ;;  %vm242_vm1 = vcmask 64512  }
   0x8   :  { %v25_v8 = vld [vmem:[%s953_s0 + $0x20] sm:$0xff]  ;;  %v26_v9 = vld [vmem:[%s953_s0 + $0x28] sm:$0xff]  ;;  %v27_v10 = vld [vmem:[%s953_s0 + $0x30] sm:$0xff] }
   0x9   :  { %681 = vmatpush3.msra.mxu0 %v39_v4  ;;  %v28_v11 = vld [vmem:[%s953_s0 + $0x38] sm:$0xff]  ;;  %v29_v12 = vld [vmem:[%s953_s0 + $0x40] sm:$0xff]  ;;  %v30_v13 = vld [vmem:[%s953_s0 + $0x48] sm:$0xff] }
   0xa   :  { %683 = vmatmul.mubr.msk.f32.vlgmr.msra.gmra.mrb[0].mxu0 %vm47_vm0, %v22_v5  ;;  %v31_v14 = vld [vmem:[%s953_s0 + $0x50] sm:$0xff]  ;;  %v32_v15 = vld [vmem:[%s953_s0 + $0x58] sm:$0xff]  ;;  %v33_v16 = vld [vmem:[%s953_s0 + $0x60] sm:$0xff] }
   0xb   :  { %685 = vmatprep.mubr.msk.f32.mxu0 %vm47_vm0, %v23_v6  ;;  %v34_v17 = vld [vmem:[%s953_s0 + $0x68] sm:$0xff]  ;;  %v35_v18 = vld [vmem:[%s953_s0 + $0x70] sm:$0xff]  ;;  %v36_v19 = vld [vmem:[%s953_s0 + $0x78] sm:$0xff]  ;;  %s796_s0 = smov [#allocation2]  }
   0xc   :  { %v241_v20 = vld [vmem:[%s955_s2] sm:$0xff]  ;;  %s571_s2 = sshll.u32 %s796_s0, 4  ;;  %s572_s2 = int_to_ptr.vmem [resolvable:$true] %s571_s2 }
   0xd   :  { %706 = vmatprep.subr.mxu1 %v241_v20  ;;  %v598_v21 = vld [vmem:[%s956_s3] ss:$0 sm:$0xff]  ;;  %s748_s3 = scalar_lea.vmem %s572_s2, 2048  ;;  %p753_p1 = scmp.lt.s32.totalorder %s572_s2, %s572_s2 }
   0xe   :  { %686 = vmatmul.mubr.msk.f32.gmra.mrb[2].mxu0 %vm47_vm0, %v24_v7  ;;  %707 = vmatpush3.msra.mxu1 %v241_v20  ;;  %p749_p0 = scmp.ne.s32.totalorder %s572_s2, %s748_s3  ;;  %p754_p2 = scmp.lt.s32.totalorder %s748_s3, %s748_s3 }
   0xf   :  { %688 = vmatprep.mubr.msk.f32.mxu0 %vm47_vm0, %v25_v8  ;;  %732 = vmatprep.subr.mxu1 %v241_v20 }
  0x10   :  { %p755_p3 = por %p754_p2, %p753_p1 }
  0x12   :  { %689 = vmatmul.mubr.msk.f32.gmra.mrb[4].mxu0 %vm47_vm0, %v26_v9  ;;  %p756_p4 = pnand %p755_p3, %p749_p0 }
  0x13   :  { %691 = vmatprep.mubr.msk.f32.mxu0 %vm47_vm0, %v27_v10 }
  0x16   :  { %692 = vmatmul.mubr.msk.f32.gmra.mrb[6].mxu0 %vm47_vm0, %v28_v11 }
  0x17   :  { %694 = vmatprep.mubr.msk.f32.mxu0 %vm47_vm0, %v29_v12 }
  0x1a   :  { %695 = vmatmul.mubr.msk.f32.gmra.mrb[8].mxu0 %vm47_vm0, %v30_v13 }
  0x1b   :  { %697 = vmatprep.mubr.msk.f32.mxu0 %vm47_vm0, %v31_v14 }
  0x1e   :  { %698 = vmatmul.mubr.msk.f32.gmra.mrb[10].mxu0 %vm47_vm0, %v32_v15 }
  0x1f   :  { %700 = vmatprep.mubr.msk.f32.mxu0 %vm47_vm0, %v33_v16 }
  0x22   :  { %701 = vmatmul.mubr.msk.f32.gmra.mrb[12].mxu0 %vm47_vm0, %v34_v17 }
  0x23   :  { %703 = vmatprep.mubr.msk.f32.mxu0 %vm47_vm0, %v35_v18 }
  0x26   :  { %704 = vmatmul.mubr.msk.f32.gmra.mrb[14].mxu0 %vm47_vm0, %v36_v19 }
  0xdd   :  { %v684_v22 = vpop.f32.mrb[0].mxu0 }
  0xde   :  { %v162_v23 = vpop.f32.mrb[1].mxu0  ;;  %v168_v25 = vadd.f32 %v684_v22, %v598_v21 }
  0xdf   :  { %v163_v24 = vadd.f32 %v598_v21, %v162_v23 }
  0xe1   :  { %v687_v26 = vpop.f32.mrb[2].mxu0  ;;  %708 = vmatprep.mubr.msk.f32.mxu1 %vm242_vm1, %v163_v24 }
  0xe2   :  { %v172_v27 = vpop.f32.mrb[3].mxu0  ;;  %709 = vmatmul.mubr.msk.f32.vlgmr.msra.gmra.mrb[0].mxu1 %vm242_vm1, %v168_v25  ;;  %v178_v29 = vadd.f32 %v687_v26, %v598_v21 }
  0xe3   :  { %v173_v28 = vadd.f32 %v598_v21, %v172_v27  ;;  %733 = vmatpush3.msra.mxu1 %v241_v20 }
  0xe5   :  { %v690_v30 = vpop.f32.mrb[4].mxu0  ;;  %711 = vmatprep.mubr.msk.f32.mxu1 %vm242_vm1, %v173_v28 }
  0xe6   :  { %v188_v31 = vadd.f32 %v690_v30, %v598_v21  ;;  %v182_v32 = vpop.f32.mrb[5].mxu0  ;;  %712 = vmatmul.mubr.msk.f32.gmra.mrb[2].mxu1 %vm242_vm1, %v178_v29 }
  0xe7   :  { %v183_v33 = vadd.f32 %v598_v21, %v182_v32 }
  0xe8   :  { %v453_v34 = vmax.f32 %v168_v25, %v188_v31 }
  0xe9   :  { %v452_v35 = vmax.f32 %v163_v24, %v183_v33  ;;  %v693_v36 = vpop.f32.mrb[6].mxu0  ;;  %714 = vmatprep.mubr.msk.f32.mxu1 %vm242_vm1, %v183_v33 }
  0xea   :  { %v198_v37 = vadd.f32 %v693_v36, %v598_v21  ;;  %v192_v38 = vpop.f32.mrb[7].mxu0  ;;  %715 = vmatmul.mubr.msk.f32.gmra.mrb[4].mxu1 %vm242_vm1, %v188_v31 }
  0xeb   :  { %v193_v39 = vadd.f32 %v598_v21, %v192_v38 }
  0xec   :  { %v455_v40 = vmax.f32 %v178_v29, %v198_v37 }
  0xed   :  { %v454_v41 = vmax.f32 %v173_v28, %v193_v39  ;;  %v696_v42 = vpop.f32.mrb[8].mxu0  ;;  %717 = vmatprep.mubr.msk.f32.mxu1 %vm242_vm1, %v193_v39 }
  0xee   :  { %v208_v43 = vadd.f32 %v696_v42, %v598_v21  ;;  %v202_v44 = vpop.f32.mrb[9].mxu0  ;;  %718 = vmatmul.mubr.msk.f32.gmra.mrb[6].mxu1 %vm242_vm1, %v198_v37 }
  0xef   :  { %v203_v45 = vadd.f32 %v598_v21, %v202_v44 }
  0xf0   :  { %v457_v46 = vmax.f32 %v453_v34, %v208_v43 }
  0xf1   :  { %v456_v47 = vmax.f32 %v452_v35, %v203_v45  ;;  %v699_v48 = vpop.f32.mrb[10].mxu0  ;;  %720 = vmatprep.mubr.msk.f32.mxu1 %vm242_vm1, %v203_v45 }
  0xf2   :  { %v218_v49 = vadd.f32 %v699_v48, %v598_v21  ;;  %v212_v50 = vpop.f32.mrb[11].mxu0  ;;  %721 = vmatmul.mubr.msk.f32.gmra.mrb[8].mxu1 %vm242_vm1, %v208_v43 }
  0xf3   :  { %v213_v51 = vadd.f32 %v598_v21, %v212_v50 }
  0xf4   :  { %v459_v52 = vmax.f32 %v455_v40, %v218_v49 }
  0xf5   :  { %v458_v53 = vmax.f32 %v454_v41, %v213_v51  ;;  %v702_v54 = vpop.f32.mrb[12].mxu0  ;;  %723 = vmatprep.mubr.msk.f32.mxu1 %vm242_vm1, %v213_v51 }
  0xf6   :  { %v228_v55 = vadd.f32 %v702_v54, %v598_v21  ;;  %v222_v56 = vpop.f32.mrb[13].mxu0  ;;  %724 = vmatmul.mubr.msk.f32.gmra.mrb[10].mxu1 %vm242_vm1, %v218_v49 }
  0xf7   :  { %v223_v57 = vadd.f32 %v598_v21, %v222_v56 }
  0xf8   :  { %v461_v58 = vmax.f32 %v457_v46, %v228_v55 }
  0xf9   :  { %v460_v59 = vmax.f32 %v456_v47, %v223_v57  ;;  %v705_v60 = vpop.f32.mrb[14].mxu0  ;;  %726 = vmatprep.mubr.msk.f32.mxu1 %vm242_vm1, %v223_v57 }
  0xfa   :  { %v238_v61 = vadd.f32 %v705_v60, %v598_v21  ;;  %v232_v62 = vpop.f32.mrb[15].mxu0  ;;  %727 = vmatmul.mubr.msk.f32.gmra.mrb[12].mxu1 %vm242_vm1, %v228_v55 }
  0xfb   :  { %v233_v63 = vadd.f32 %v598_v21, %v232_v62 }
  0xfc   :  { %v463_v0 = vmax.f32 %v459_v52, %v238_v61 }
  0xfd   :  { %v462_v1 = vmax.f32 %v458_v53, %v233_v63  ;;  %729 = vmatprep.mubr.msk.f32.mxu1 %vm242_vm1, %v233_v63 }
  0xfe   :  { %730 = vmatmul.mubr.msk.f32.gmra.mrb[14].mxu1 %vm242_vm1, %v238_v61 }
  0xff   :  { %734 = vmatprep.mubr.msk.f32.mxu1 %vm242_vm1, %v460_v59 }
 0x102   :  { %735 = vmatmul.mubr.msk.f32.vlgmr.msra.gmra.mrb[16].mxu1 %vm242_vm1, %v461_v58 }
 0x103   :  { %737 = vmatprep.mubr.msk.f32.mxu1 %vm242_vm1, %v462_v1 }
 0x106   :  { %738 = vmatmul.mubr.msk.f32.gmra.mrb[18].mxu1 %vm242_vm1, %v463_v0 }
 0x1b5   :  { %v710_v2 = vpop.f32.mrb[0].mxu1 }
 0x1b6   :  { %437 = vst [vmem:[#allocation2 + $0x8] sm:$0xff] %v710_v2  ;;  %v357_v3 = vpop.f32.mrb[1].mxu1 }
 0x1b7   :  { %436 = vst [vmem:[#allocation2] sm:$0xff] %v357_v3 }
 0x1b9   :  { %v713_v4 = vpop.f32.mrb[2].mxu1 }
 0x1ba   :  { %439 = vst [vmem:[#allocation2 + $0x18] sm:$0xff] %v713_v4  ;;  %v367_v5 = vpop.f32.mrb[3].mxu1 }
 0x1bb   :  { %438 = vst [vmem:[#allocation2 + $0x10] sm:$0xff] %v367_v5 }
 0x1bd   :  { %v716_v6 = vpop.f32.mrb[4].mxu1 }
 0x1be   :  { %441 = vst [vmem:[#allocation2 + $0x28] sm:$0xff] %v716_v6  ;;  %v377_v7 = vpop.f32.mrb[5].mxu1 }
 0x1bf   :  { %440 = vst [vmem:[#allocation2 + $0x20] sm:$0xff] %v377_v7 }
 0x1c1   :  { %v719_v8 = vpop.f32.mrb[6].mxu1 }
 0x1c2   :  { %443 = vst [vmem:[#allocation2 + $0x38] sm:$0xff] %v719_v8  ;;  %v387_v9 = vpop.f32.mrb[7].mxu1 }
 0x1c3   :  { %442 = vst [vmem:[#allocation2 + $0x30] sm:$0xff] %v387_v9 }
 0x1c5   :  { %v722_v10 = vpop.f32.mrb[8].mxu1 }
 0x1c6   :  { %445 = vst [vmem:[#allocation2 + $0x48] sm:$0xff] %v722_v10  ;;  %v397_v11 = vpop.f32.mrb[9].mxu1 }
 0x1c7   :  { %444 = vst [vmem:[#allocation2 + $0x40] sm:$0xff] %v397_v11 }
 0x1c9   :  { %v725_v12 = vpop.f32.mrb[10].mxu1 }
 0x1ca   :  { %447 = vst [vmem:[#allocation2 + $0x58] sm:$0xff] %v725_v12  ;;  %v407_v13 = vpop.f32.mrb[11].mxu1 }
 0x1cb   :  { %446 = vst [vmem:[#allocation2 + $0x50] sm:$0xff] %v407_v13 }
 0x1cd   :  { %v728_v14 = vpop.f32.mrb[12].mxu1 }
 0x1ce   :  { %449 = vst [vmem:[#allocation2 + $0x68] sm:$0xff] %v728_v14  ;;  %v417_v15 = vpop.f32.mrb[13].mxu1 }
 0x1cf   :  { %448 = vst [vmem:[#allocation2 + $0x60] sm:$0xff] %v417_v15 }
 0x1d1   :  { %v731_v16 = vpop.f32.mrb[14].mxu1 }
 0x1d2   :  { %451 = vst [vmem:[#allocation2 + $0x78] sm:$0xff] %v731_v16  ;;  %v427_v17 = vpop.f32.mrb[15].mxu1 }
 0x1d3   :  { %450 = vst [vmem:[#allocation2 + $0x70] sm:$0xff] %v427_v17 }
 0x1d4   :  { %759 = shalt.err (!%p756_p4)
}
 0x1d5   :  { %s760_s10 = scalar_lea.hbm %s957_s4, 2048 }
 0x1d6   :  { %p761_p5 = scmp.ne.s32.totalorder %s957_s4, %s760_s10  ;;  %p764_p6 = scmp.lt.u32.totalorder %s760_s10, %s957_s4 }
 0x1d8   :  { %p766_p7 = pnand %p764_p6, %p761_p5 }
 0x1da   :  { %769 = shalt.err (!%p766_p7)
}
 0x1db   :  { %s797_s15 = smov 128   ;;  %s798_s16 = smov 8   ;;  %v736_v18 = vpop.f32.mrb[16].mxu1 }
 0x1dc   :  { %577 = dma.vmem_to_hbm [thread:$0]  %s572_s2, 2048, %s957_s4, [#allocation3], %s797_s15, %s797_s15, %s798_s16   ;;  %563 = vst [vmem:[#allocation4 + $0x8] sm:$0xff] %v736_v18  ;;  %v543_v19 = vpop.f32.mrb[17].mxu1 }
 0x1dd   :  { %s799_s19 = smov [#allocation4]   ;;  %562 = vst [vmem:[#allocation4] sm:$0xff] %v543_v19  ;;  %v739_v20 = vpop.f32.mrb[18].mxu1 }
 0x1de   :  { %s583_s20 = sshll.u32 %s799_s19, 4  ;;  %565 = vst [vmem:[#allocation4 + $0x18] sm:$0xff] %v739_v20  ;;  %v553_v21 = vpop.f32.mrb[19].mxu1  ;;  %s584_s20 = int_to_ptr.vmem [resolvable:$true] %s583_s20 }
 0x1df   :  { %564 = vst [vmem:[#allocation4 + $0x10] sm:$0xff] %v553_v21  ;;  %s770_s21 = scalar_lea.vmem %s584_s20, 512  ;;  %p775_p9 = scmp.lt.s32.totalorder %s584_s20, %s584_s20 }
 0x1e0   :  { %p771_p8 = scmp.ne.s32.totalorder %s584_s20, %s770_s21  ;;  %p776_p10 = scmp.lt.s32.totalorder %s770_s21, %s770_s21 }
 0x1e2   :  { %p777_p11 = por %p776_p10, %p775_p9 }
 0x1e4   :  { %p778_p12 = pnand %p777_p11, %p771_p8 }
 0x1e6   :  { %781 = shalt.err (!%p778_p12)
}
 0x1e7   :  { %s782_s23 = scalar_lea.hbm %s958_s5, 512 }
 0x1e8   :  { %p783_p13 = scmp.ne.s32.totalorder %s958_s5, %s782_s23  ;;  %p786_p0 = scmp.lt.u32.totalorder %s782_s23, %s958_s5 }
 0x1ea   :  { %p788_p1 = pnand %p786_p0, %p783_p13 }
 0x1ec   :  { %791 = shalt.err (!%p788_p1)
}
 0x1ed   :  { %589 = dma.vmem_to_hbm [thread:$0]  %s584_s20, 512, %s958_s5, [#allocation5], %s797_s15, %s797_s15, %s798_s16  }
 0x1ee   :  { %792 = dma.done.wait [#allocation3], 2048  }
 0x1ef   :  { %793 = vsyncadd [#allocation3], 4294965248 }
 0x1f0   :  { %794 = dma.done.wait [#allocation5], 512  }
 0x1f1   :  { %795 = vsyncadd [#allocation5], 4294966784 }
 0x1f2   :  { %596 = vsyncpa [#allocation3], 1 }
 0x1f3   :  { %597 = vsyncpa [#allocation5], 1 }

</bundles_post_ra>
